<compile_context>
chip_gen: v6e
topology: v6e:2x2x1
jax: 0.10.0
libtpu: 0.0.40
codegen_flags: <defaults>
</compile_context>

<pallas_src>
import functools

import jax
import jax.numpy as jnp
from jax.experimental import pallas as pl
from jax.experimental.pallas import tpu as pltpu


def _round_up(x, m):
    return (x + m - 1) // m * m


def _vmem_limits():
    """(vmem_limit_bytes for the compiler, tiling budget) per generation:
    v7x (64 MiB physical) -> ~48 / ~36 MiB; v5e/v6e (128 MiB) -> ~96 / ~72 MiB."""
    phys = 64 * 1024 * 1024  # conservative fallback (v7x physical VMEM)
    try:
        phys = int(pltpu.get_tpu_info().vmem_capacity_bytes)
    except Exception:
        pass
    limit = int(phys * 0.75)
    budget = int(limit * 0.75)
    return limit, budget


def _pick_tile_d(N, D, budget_bytes):
    """Largest lane-dense feature tile whose double-buffered in+out blocks plus
    f32 temporaries (~6 * N * tile_d * 4B) fit the budget.  Returns 0 if even a
    128-wide single-pass block does not fit (-> two-phase path).  Prefers >=2
    feature blocks (so the 'parallel' axis can split across v7x's 2 TCs) as
    long as blocks stay >=512 wide (>=85% of HBM roofline)."""
    per_col_bytes = 6 * N * 4
    cands = sorted({c for c in (D, 16384, 8192, 4096, 2048, 1024, 512, 256, 128)
                    if c <= D and D % c == 0}, reverse=True)
    fitting = [c for c in cands if c * per_col_bytes <= budget_bytes]
    if not fitting:
        return 0
    for c in fitting:
        if D // c >= 2 and c >= 512:
            return c
    return fitting[0]


def _batchnorm_kernel(x_ref, gamma_ref, beta_ref, o_ref, *, eps):
    """Single pass: whole batch resident for this feature block."""
    x = x_ref[...].astype(jnp.float32)                 # f32 stats regardless of x dtype
    n = x.shape[0]
    s = jnp.sum(x, axis=0, keepdims=True)              # (1, TILE_D)
    sq = jnp.sum(x * x, axis=0, keepdims=True)         # no (N, TILE_D) diff temporary
    mean = s * (1.0 / n)
    var = (sq - mean * s) * (1.0 / max(n - 1, 1))      # torch.std: unbiased (N-1)
    std = jnp.sqrt(jnp.maximum(var, 0.0))
    inv = 1.0 / (std + eps)                            # exact; only (1, TILE_D) work
    scale = gamma_ref[...] * inv
    bias = beta_ref[...] - mean * scale
    o_ref[...] = (x * scale + bias).astype(o_ref.dtype)  # one FMA per element


def _stats_kernel(x_ref, sum_ref, sq_ref):
    """Phase 1 (large-N path): accumulate per-feature f32 sum / sum-of-squares
    over the trailing 'arbitrary' N grid axis into resident output blocks."""
    @pl.when(pl.program_id(1) == 0)
    def _():
        sum_ref[...] = jnp.zeros_like(sum_ref)
        sq_ref[...] = jnp.zeros_like(sq_ref)
    x = x_ref[...].astype(jnp.float32)
    sum_ref[...] += jnp.sum(x, axis=0, keepdims=True)
    sq_ref[...] += jnp.sum(x * x, axis=0, keepdims=True)


def _apply_kernel(x_ref, sum_ref, sq_ref, gamma_ref, beta_ref, o_ref, *, eps, n_rows):
    """Phase 2: fold stats into per-feature scale/bias (tiny (1, TILE_D) work)
    and stream x through one FMA per element."""
    s = sum_ref[...]
    sq = sq_ref[...]
    mean = s * (1.0 / n_rows)
    var = (sq - mean * s) * (1.0 / max(n_rows - 1, 1))
    std = jnp.sqrt(jnp.maximum(var, 0.0))
    scale = gamma_ref[...] / (std + eps)
    bias = beta_ref[...] - mean * scale
    x = x_ref[...].astype(jnp.float32)
    o_ref[...] = (x * scale + bias).astype(o_ref.dtype)


def _two_phase(x, gamma2d, beta2d, eps, N, D, budget, limit, tile_n, tile_d):
    """Large-N path: two pallas_calls (stats accumulation, then apply)."""
    if tile_d is None:
        tile_d = next(c for c in (2048, 1024, 512, 256, 128) if D % c == 0)
    if tile_n is None:
        per_row = 6 * tile_d * 4
        cap = max(8, (budget // per_row) // 8 * 8)
        tile_n = min(_round_up(N, 8), cap, 4096)
    tile_n = max(8, tile_n // 8 * 8)
    Np = _round_up(N, tile_n)
    if Np != x.shape[0]:
        x = jnp.pad(x, ((0, Np - x.shape[0]), (0, 0)))  # zero rows don't perturb sums
    nd, nn = D // tile_d, Np // tile_n

    sums, sqs = pl.pallas_call(
        _stats_kernel,
        out_shape=(jax.ShapeDtypeStruct((1, D), jnp.float32),
                   jax.ShapeDtypeStruct((1, D), jnp.float32)),
        grid_spec=pltpu.PrefetchScalarGridSpec(
            num_scalar_prefetch=0,
            grid=(nd, nn),                               # reduction (N) axis last
            in_specs=[pl.BlockSpec((tile_n, tile_d), lambda j, i: (i, j))],
            out_specs=[pl.BlockSpec((1, tile_d), lambda j, i: (0, j)),
                       pl.BlockSpec((1, tile_d), lambda j, i: (0, j))],
        ),
        compiler_params=pltpu.CompilerParams(
            dimension_semantics=("parallel", "arbitrary"),
            vmem_limit_bytes=limit),
    )(x)

    out = pl.pallas_call(
        functools.partial(_apply_kernel, eps=eps, n_rows=N),
        out_shape=jax.ShapeDtypeStruct((Np, D), x.dtype),
        grid_spec=pltpu.PrefetchScalarGridSpec(
            num_scalar_prefetch=0,
            grid=(nd, nn),
            in_specs=[pl.BlockSpec((tile_n, tile_d), lambda j, i: (i, j)),
                      pl.BlockSpec((1, tile_d), lambda j, i: (0, j)),
                      pl.BlockSpec((1, tile_d), lambda j, i: (0, j)),
                      pl.BlockSpec((1, tile_d), lambda j, i: (0, j)),
                      pl.BlockSpec((1, tile_d), lambda j, i: (0, j))],
            out_specs=pl.BlockSpec((tile_n, tile_d), lambda j, i: (i, j)),
        ),
        compiler_params=pltpu.CompilerParams(
            dimension_semantics=("parallel", "parallel"),
            vmem_limit_bytes=limit),
    )(x, sums, sqs, gamma2d, beta2d)
    return out[:N]  # strip row padding (column padding stripped by caller)


def batch_norm(x, gamma, beta, eps=1e-6, *, tile_d=None, tile_n=None, two_phase=None):
    """x: (N, D); gamma/beta: (D,).  Matches the PyTorch module:
    gamma * (x - mean) / (std_unbiased + eps) + beta, stats over dim 0."""
    N, D0 = x.shape
    limit, budget = _vmem_limits()

    # Lane-dense feature axis: pad D to a multiple of 128 (padded columns carry
    # gamma=0 -> output 0 -> sliced off), avoiding masked partial vector stores.
    D = _round_up(D0, 128)
    if D != D0:
        x = jnp.pad(x, ((0, 0), (0, D - D0)))
        gamma = jnp.pad(gamma, (0, D - D0))
        beta = jnp.pad(beta, (0, D - D0))
    gamma2d = gamma.reshape(1, D).astype(jnp.float32)
    beta2d = beta.reshape(1, D).astype(jnp.float32)

    auto_td = _pick_tile_d(N, D, budget)
    use_two_phase = (auto_td == 0) if two_phase is None else bool(two_phase)

    if not use_two_phase:
        td = tile_d if tile_d is not None else (auto_td if auto_td else 128)
        assert D % td == 0 and (td % 128 == 0 or td == D), (D, td)
        out = pl.pallas_call(
            functools.partial(_batchnorm_kernel, eps=eps),
            out_shape=jax.ShapeDtypeStruct((N, D), x.dtype),
            grid_spec=pltpu.PrefetchScalarGridSpec(
                num_scalar_prefetch=0,
                grid=(D // td,),                          # tile over features only
                in_specs=[pl.BlockSpec((N, td), lambda j: (0, j)),   # x column block
                          pl.BlockSpec((1, td), lambda j: (0, j)),   # gamma
                          pl.BlockSpec((1, td), lambda j: (0, j))],  # beta
                out_specs=pl.BlockSpec((N, td), lambda j: (0, j)),
            ),
            compiler_params=pltpu.CompilerParams(
                dimension_semantics=("parallel",),        # feature tiles independent
                vmem_limit_bytes=limit),
        )(x, gamma2d, beta2d)
    else:
        out = _two_phase(x, gamma2d, beta2d, eps, N, D, budget, limit, tile_n, tile_d)

    return out[:, :D0] if D != D0 else out


def _reference(x, gamma, beta, eps):
    n = x.shape[0]
    mean = jnp.mean(x, axis=0, keepdims=True)
    std = jnp.sqrt(jnp.sum((x - mean) ** 2, axis=0, keepdims=True) / (n - 1))
    return gamma * ((x - mean) / (std + eps)) + beta


if __name__ == "__main__":
    eps = 1e-6

    # 1) Module-consistent small shape: batch=8, embedding_dim=32 (gamma=1, beta=0).
    key = jax.random.PRNGKey(0)
    N, D = 8, 32
    x = jax.random.normal(key, (N, D), dtype=jnp.float32)
    gamma = jnp.ones((D,), dtype=jnp.float32)
    beta = jnp.zeros((D,), dtype=jnp.float32)
    out = jax.block_until_ready(batch_norm(x, gamma, beta, eps))
    ref = _reference(x, gamma, beta, eps)
    assert out.shape == (N, D)
    assert jnp.allclose(out, ref, atol=2e-3, rtol=2e-3), "mismatch (small shape)"

    # 2) Lane-dense multi-tile single-pass path (previously failing config).
    k1, k2, k3, k4 = jax.random.split(jax.random.PRNGKey(1), 4)
    N2, D2 = 16, 512
    x2 = jax.random.normal(k1, (N2, D2), dtype=jnp.float32) * 2.0 + 0.5
    g2 = jax.random.normal(k2, (D2,), dtype=jnp.float32)
    b2 = jax.random.normal(k3, (D2,), dtype=jnp.float32)
    out2 = jax.block_until_ready(batch_norm(x2, g2, b2, eps, tile_d=128))
    ref2 = _reference(x2, g2, b2, eps)
    assert jnp.allclose(out2, ref2, atol=2e-3, rtol=2e-3), "mismatch (tiled shape)"

    # 3) Two-phase (large-N) path, forced, exercising N- and D-padding + multi-tile.
    k5, k6, k7 = jax.random.split(k4, 3)
    N3, D3 = 100, 200
    x3 = jax.random.normal(k5, (N3, D3), dtype=jnp.float32) + 1.0
    g3 = jax.random.normal(k6, (D3,), dtype=jnp.float32)
    b3 = jax.random.normal(k7, (D3,), dtype=jnp.float32)
    out3 = jax.block_until_ready(
        batch_norm(x3, g3, b3, eps, two_phase=True, tile_n=32, tile_d=128))
    ref3 = _reference(x3, g3, b3, eps)
    assert out3.shape == (N3, D3)
    assert jnp.allclose(out3, ref3, atol=2e-3, rtol=2e-3), "mismatch (two-phase shape)"

    print("KERNEL_OK")
</pallas_src>

<mosaic_0001>
module attributes {stable_mosaic.version = 11 : i64} {
  func.func @_batchnorm_kernel(%arg0: i32, %arg1: memref<8x128xf32, #tpu.memory_space<vmem>>, %arg2: memref<1x128xf32, #tpu.memory_space<vmem>>, %arg3: memref<1x128xf32, #tpu.memory_space<vmem>>, %arg4: memref<8x128xf32, #tpu.memory_space<vmem>>) attributes {dimension_semantics = [#tpu.dimension_semantics<parallel>], iteration_bounds = array<i64: 1>, scalar_prefetch = 0 : i64, scratch_operands = 0 : i64, tpu.core_type = #tpu.core_type<tc>, window_params = [{transform_indices = @transform_0, window_bounds = array<i64: 8, 128>}, {transform_indices = @transform_1, window_bounds = array<i64: 1, 128>}, {transform_indices = @transform_2, window_bounds = array<i64: 1, 128>}, {transform_indices = @transform_3, window_bounds = array<i64: 8, 128>}]} {
    %c0 = arith.constant 0 : index
    %c0_0 = arith.constant 0 : index
    %0 = vector.load %arg1[%c0, %c0_0] : memref<8x128xf32, #tpu.memory_space<vmem>>, vector<8x128xf32>
    %cst = arith.constant dense<0.000000e+00> : vector<128xf32>
    %1 = vector.multi_reduction <add>, %0, %cst [0] : vector<8x128xf32> to vector<128xf32>
    %2 = vector.shape_cast %1 : vector<128xf32> to vector<1x128xf32>
    %3 = arith.mulf %0, %0 : vector<8x128xf32>
    %cst_1 = arith.constant dense<0.000000e+00> : vector<128xf32>
    %4 = vector.multi_reduction <add>, %3, %cst_1 [0] : vector<8x128xf32> to vector<128xf32>
    %5 = vector.shape_cast %4 : vector<128xf32> to vector<1x128xf32>
    %cst_2 = arith.constant 1.250000e-01 : f32
    %6 = vector.broadcast %cst_2 : f32 to vector<1x128xf32>
    %7 = arith.mulf %2, %6 : vector<1x128xf32>
    %8 = arith.mulf %7, %2 : vector<1x128xf32>
    %9 = arith.subf %5, %8 : vector<1x128xf32>
    %cst_3 = arith.constant 0.142857149 : f32
    %10 = vector.broadcast %cst_3 : f32 to vector<1x128xf32>
    %11 = arith.mulf %9, %10 : vector<1x128xf32>
    %cst_4 = arith.constant 0.000000e+00 : f32
    %12 = vector.broadcast %cst_4 : f32 to vector<1x128xf32>
    %13 = arith.maximumf %11, %12 : vector<1x128xf32>
    %14 = math.sqrt %13 : vector<1x128xf32>
    %cst_5 = arith.constant 9.99999997E-7 : f32
    %15 = vector.broadcast %cst_5 : f32 to vector<1x128xf32>
    %16 = arith.addf %14, %15 : vector<1x128xf32>
    %cst_6 = arith.constant 1.000000e+00 : f32
    %17 = vector.broadcast %cst_6 : f32 to vector<1x128xf32>
    %18 = arith.divf %17, %16 : vector<1x128xf32>
    %c0_7 = arith.constant 0 : index
    %c0_8 = arith.constant 0 : index
    %19 = vector.load %arg2[%c0_7, %c0_8] : memref<1x128xf32, #tpu.memory_space<vmem>>, vector<1x128xf32>
    %20 = arith.mulf %19, %18 : vector<1x128xf32>
    %c0_9 = arith.constant 0 : index
    %c0_10 = arith.constant 0 : index
    %21 = vector.load %arg3[%c0_9, %c0_10] : memref<1x128xf32, #tpu.memory_space<vmem>>, vector<1x128xf32>
    %22 = arith.mulf %7, %20 : vector<1x128xf32>
    %23 = arith.subf %21, %22 : vector<1x128xf32>
    %24 = vector.broadcast %20 : vector<1x128xf32> to vector<8x128xf32>
    %25 = arith.mulf %0, %24 : vector<8x128xf32>
    %26 = vector.broadcast %23 : vector<1x128xf32> to vector<8x128xf32>
    %27 = arith.addf %25, %26 : vector<8x128xf32>
    %c0_11 = arith.constant 0 : index
    %c0_12 = arith.constant 0 : index
    %28 = vector.load %arg4[%c0_11, %c0_12] : memref<8x128xf32, #tpu.memory_space<vmem>>, vector<8x128xf32>
    tpu.vector_store %arg4[%c0_11, %c0_12], %27 {strides = array<i32>} : memref<8x128xf32, #tpu.memory_space<vmem>>, vector<8x128xf32>,
    return
  }
  func.func @transform_0(%arg0: i32) -> (i32, i32) {
    %c0_i32 = arith.constant 0 : i32
    %c0_i32_0 = arith.constant 0 : i32
    return %c0_i32, %arg0 : i32, i32
  }
  func.func @transform_1(%arg0: i32) -> (i32, i32) {
    %c0_i32 = arith.constant 0 : i32
    %c0_i32_0 = arith.constant 0 : i32
    return %c0_i32, %arg0 : i32, i32
  }
  func.func @transform_2(%arg0: i32) -> (i32, i32) {
    %c0_i32 = arith.constant 0 : i32
    %c0_i32_0 = arith.constant 0 : i32
    return %c0_i32, %arg0 : i32, i32
  }
  func.func @transform_3(%arg0: i32) -> (i32, i32) {
    %c0_i32 = arith.constant 0 : i32
    %c0_i32_0 = arith.constant 0 : i32
    return %c0_i32, %arg0 : i32, i32
  }
}

</mosaic_0001>

<bundles_post_ra>
// kernel: tpu_custom_call.1
= control target key start
LH: loop header
LB: loop body
LE: loop exit
PB: predicated region body
PF: predicated region fallthrough
CT: control target
= control target key end

     0   :  { %8 = vsyncpa [#allocation3], 0  ;;  %s175_s0 = inlined_call_operand.hbm [shape: f32[8,128], index: 0, kind: input, shape index: {}]   ;;  %s176_s1 = inlined_call_operand.vmem [shape: f32[1,128], index: 1, kind: input, shape index: {}]   ;;  %s177_s2 = inlined_call_operand.vmem [shape: f32[1,128], index: 2, kind: input, shape index: {}]   ;;  %s178_s3 = inlined_call_operand.hbm [shape: f32[8,128], index: 3, kind: output, shape index: {}]  }
   0x1   :  { %9 = vsyncpa [#allocation4], 0  ;;  %s141_s12 = smov [#allocation2]  }
   0x2   :  { %s16_s13 = sshll.u32 %s141_s12, 4  ;;  %s17_s13 = int_to_ptr.vmem [resolvable:$true] %s16_s13 }
   0x3   :  { %s105_s14 = scalar_lea.vmem %s17_s13, 128  ;;  %p110_p1 = scmp.lt.s32.totalorder %s17_s13, %s17_s13 }
   0x4   :  { %p106_p0 = scmp.ne.s32.totalorder %s17_s13, %s105_s14  ;;  %p111_p2 = scmp.lt.s32.totalorder %s105_s14, %s105_s14 }
   0x6   :  { %p112_p3 = por %p111_p2, %p110_p1 }
   0x8   :  { %p113_p4 = pnand %p112_p3, %p106_p0 }
   0xa   :  { %116 = shalt.err (!%p113_p4)
}
   0xb   :  { %19 = dma.hbm_to_vmem [thread:$0]  %s175_s0, 128, %s17_s13, [#allocation3]  }
   0xc   :  { %137 = dma.done.wait [#allocation3], 128  }
   0xd   :  { %138 = vsyncadd [#allocation3], 4294967168  ;;  %v27_v0 = vld [vmem:[#allocation2] sm:$0xff]  ;;  %v62_v25 = vlaneseq  ;;  %s142_s20 = smov [#allocation5]  }
   0xe   :  { %v28_v1 = vrot.slane %v27_v0, 4  ;;  %v34_v2 = vmul.f32 %v27_v0, %v27_v0  ;;  %v56_v27 = vld [vmem:[%s176_s1] sm:$0x1]  ;;  %s82_s21 = sshll.u32 %s142_s20, 4  ;;  %s83_s21 = int_to_ptr.vmem [resolvable:$true] %s82_s21 }
   0xf   :  { %v63_v26 = vshrl.u32 %v62_v25, 7  ;;  %v58_v31 = vld [vmem:[%s177_s2] sm:$0x1]  ;;  %s117_s22 = scalar_lea.vmem %s83_s21, 128  ;;  %p122_p6 = scmp.lt.s32.totalorder %s83_s21, %s83_s21 }
  0x10   :  { %v29_v3 = vadd.f32 %v28_v1, %v27_v0  ;;  %v35_v4 = vrot.slane %v34_v2, 4  ;;  %p118_p5 = scmp.ne.s32.totalorder %s83_s21, %s117_s22  ;;  %p123_p7 = scmp.lt.s32.totalorder %s117_s22, %s117_s22 }
  0x11   :  { %v64_v28 = vsub.s32 0, %v63_v26 }
  0x12   :  { %v30_v5 = vrot.slane %v29_v3, 2  ;;  %v36_v6 = vadd.f32 %v35_v4, %v34_v2  ;;  %p124_p8 = por %p123_p7, %p122_p6 }
  0x14   :  { %v31_v7 = vadd.f32 %v30_v5, %v29_v3  ;;  %v37_v8 = vrot.slane %v36_v6, 2  ;;  %p125_p9 = pnand %p124_p8, %p118_p5 }
  0x16   :  { %v32_v9 = vrot.slane %v31_v7, 1  ;;  %v38_v10 = vadd.f32 %v37_v8, %v36_v6 }
  0x18   :  { %v33_v11 = vadd.f32 %v32_v9, %v31_v7  ;;  %v39_v12 = vrot.slane %v38_v10, 1 }
  0x1a   :  { %v40_v13 = vadd.f32 %v39_v12, %v38_v10  ;;  %v41_v14 = vmul.f32 0.125, %v33_v11 }
  0x1c   :  { %v42_v15 = vmul.f32 %v41_v14, %v33_v11 }
  0x1e   :  { %v43_v16 = vsub.f32 %v40_v13, %v42_v15 }
  0x20   :  { %v44_v17 = vmul.f32 0.14285715, %v43_v16 }
  0x22   :  { %v45_v18 = vmax.f32 %v44_v17, 0.0 }
  0x24   :  { %93 = vrsqrt.f32 %v45_v18  ;;  %vm48_vm0 = vcmp.eq.f32.partialorder %v45_v18, inf  ;;  %v51_v20 = vand.u32 2147483648, %v45_v18  ;;  %vm50_vm1 = vcmp.eq.f32.partialorder %v45_v18, 0.0 }
  0x31   :  { %v94_v19 = vpop.eup %93 }
  0x32   :  { %v47_v21 = vmul.f32 %v94_v19, %v45_v18 }
  0x34   :  { %v49_v22 = vsel %vm48_vm0, %v45_v18, %v47_v21 }
  0x35   :  { %v52_v23 = vsel %vm50_vm1, %v51_v20, %v49_v22 }
  0x36   :  { %v53_v24 = vadd.f32 1e-06, %v52_v23 }
  0x38   :  { %95 = vrcp.f32 %v53_v24 }
  0x45   :  { %v96_v29 = vpop.eup %95 }
  0x46   :  { %v57_v30 = vmul.f32 %v96_v29, %v56_v27 }
  0x48   :  { %v59_v32 = vmul.f32 %v57_v30, %v41_v14  ;;  %v65_v33 = vrot.slane %v57_v30, %v64_v28 }
  0x4a   :  { %v60_v34 = vsub.f32 %v58_v31, %v59_v32  ;;  %v67_v35 = vmul.f32 %v65_v33, %v27_v0 }
  0x4c   :  { %v72_v36 = vrot.slane %v60_v34, %v64_v28 }
  0x4e   :  { %v74_v37 = vadd.f32 %v72_v36, %v67_v35 }
  0x50   :  { %75 = vst [vmem:[#allocation5] sm:$0xff] %v74_v37 }
  0x51   :  { %128 = shalt.err (!%p125_p9)
}
  0x52   :  { %85 = dma.vmem_to_hbm [thread:$0]  %s83_s21, 128, %s178_s3, [#allocation4]  }
  0x53   :  { %139 = dma.done.wait [#allocation4], 128  }
  0x54   :  { %140 = vsyncadd [#allocation4], 4294967168 }
  0x55   :  { %89 = vsyncpa [#allocation3], 1 }
  0x56   :  { %90 = vsyncpa [#allocation4], 1 }

</bundles_post_ra>
